<compile_context>
chip_gen: v7x
topology: tpu7x:2x2x1
jax: 0.10.0
libtpu: 0.0.40
codegen_flags: <defaults>
</compile_context>

<pallas_src>
import jax
import jax.numpy as jnp
from jax.experimental import pallas as pl
from jax.experimental.pallas import tpu as pltpu

BN_EPS = 1e-5
_VMEM_LIMIT = 32 * 1024 * 1024   # safe on v5e/v6e/v7x scoped limits


def _stats_kernel(x_ref, w_ref, sy_ref, syy_ref):
    """Phase A: per-image 1x1-conv matmul (y kept in VMEM only); accumulate
    per-channel sum(y) / sum(y*y) into split-resident (C_out, 1) partials."""
    @pl.when(pl.program_id(1) == 0)
    def _init():
        sy_ref[...] = jnp.zeros_like(sy_ref)
        syy_ref[...] = jnp.zeros_like(syy_ref)

    # bf16 (or f32) operands, f32 accumulation on the MXU.
    y = jnp.dot(w_ref[...], x_ref[...], preferred_element_type=jnp.float32)
    sy_ref[...] += jnp.sum(y, axis=1, keepdims=True)
    syy_ref[...] += jnp.sum(y * y, axis=1, keepdims=True)


def _conv_bn_kernel(x_ref, w_ref, scale_ref, shift_ref, o_ref):
    """Phase B: recompute y = W @ x on the MXU and apply the fused BN affine."""
    y = jnp.dot(w_ref[...], x_ref[...], preferred_element_type=jnp.float32)
    o_ref[...] = (y * scale_ref[...] + shift_ref[...]).astype(o_ref.dtype)


def downsample_forward(x, conv_w, gamma, beta, *, compute_dtype=jnp.bfloat16):
    """x: (N, C_in, H, W) NCHW.  conv_w: (C_out, C_in, 1, 1).  gamma/beta: (C_out,)."""
    N, C_in, H, W = x.shape
    C_out = conv_w.shape[0]
    Ho, Wo = (H + 1) // 2, (W + 1) // 2
    Mimg = Ho * Wo                     # per-image output pixels
    M_total = N * Mimg                 # BN reduction size

    # --- glue (single cheap pass over x): stride-2 subsample + cast; the
    #     reshape merging (Ho, Wo) is free and we stay in NCHW throughout.
    xs = x[:, :, ::2, ::2].astype(compute_dtype).reshape(N, C_in, Mimg)
    w2 = conv_w.reshape(C_out, C_in).astype(compute_dtype)

    itemsize = jnp.dtype(compute_dtype).itemsize

    # ---- Phase A: per-channel sum / sum-of-squares of y = W @ X.
    #      Leading "parallel" split axis gives each TensorCore (v7x megacore)
    #      its own partial-sum row; the inner image axis is the reduction.
    n_split = 2 if N % 2 == 0 else 1
    n_inner = N // n_split

    sy, syy = pl.pallas_call(
        _stats_kernel,
        out_shape=(jax.ShapeDtypeStruct((n_split, C_out, 1), jnp.float32),
                   jax.ShapeDtypeStruct((n_split, C_out, 1), jnp.float32)),
        grid=(n_split, n_inner),
        in_specs=[
            pl.BlockSpec((None, C_in, Mimg),
                         lambda s, b: (s * n_inner + b, 0, 0)),
            pl.BlockSpec((C_out, C_in), lambda s, b: (0, 0)),
        ],
        out_specs=(
            pl.BlockSpec((None, C_out, 1), lambda s, b: (s, 0, 0)),
            pl.BlockSpec((None, C_out, 1), lambda s, b: (s, 0, 0)),
        ),
        compiler_params=pltpu.CompilerParams(
            dimension_semantics=("parallel", "arbitrary"),
            vmem_limit_bytes=_VMEM_LIMIT),
        cost_estimate=pl.CostEstimate(
            flops=2 * M_total * C_in * C_out + 3 * M_total * C_out,
            transcendentals=0,
            bytes_accessed=M_total * C_in * itemsize
                           + C_out * C_in * itemsize
                           + 2 * n_split * C_out * 4),
    )(xs, w2)

    # ---- finalize BN scale/shift in plain JAX (O(C_out) work; keeps the
    #      per-core partial accumulators race-free and the kernel branch-free).
    sum_y = jnp.sum(sy, axis=0)[:, 0]            # (C_out,)
    sum_yy = jnp.sum(syy, axis=0)[:, 0]
    inv_m = 1.0 / float(M_total)
    mean = sum_y * inv_m
    var = jnp.maximum(sum_yy * inv_m - mean * mean, 0.0)   # biased variance
    inv = jax.lax.rsqrt(var + BN_EPS)
    g32 = gamma.astype(jnp.float32)
    b32 = beta.astype(jnp.float32)
    scale = (g32 * inv).reshape(C_out, 1)
    shift = (b32 - mean * g32 * inv).reshape(C_out, 1)

    # ---- Phase B: recompute the matmul and fuse the BN affine; the output is
    #      written exactly once, already in NCHW layout (lane dim = Ho*Wo).
    out = pl.pallas_call(
        _conv_bn_kernel,
        out_shape=jax.ShapeDtypeStruct((N, C_out, Mimg), jnp.float32),
        grid=(N,),
        in_specs=[
            pl.BlockSpec((None, C_in, Mimg), lambda i: (i, 0, 0)),
            pl.BlockSpec((C_out, C_in), lambda i: (0, 0)),
            pl.BlockSpec((C_out, 1), lambda i: (0, 0)),
            pl.BlockSpec((C_out, 1), lambda i: (0, 0)),
        ],
        out_specs=pl.BlockSpec((None, C_out, Mimg), lambda i: (i, 0, 0)),
        compiler_params=pltpu.CompilerParams(
            dimension_semantics=("parallel",),
            vmem_limit_bytes=_VMEM_LIMIT),
        cost_estimate=pl.CostEstimate(
            flops=2 * M_total * C_in * C_out + 2 * M_total * C_out,
            transcendentals=0,
            bytes_accessed=M_total * C_in * itemsize
                           + C_out * C_in * itemsize
                           + M_total * C_out * 4 + 2 * C_out * 4),
    )(xs, w2, scale, shift)

    return out.reshape(N, C_out, Ho, Wo)


def _reference(x, conv_w, gamma, beta):
    """Plain-JAX reference for the same forward (training-mode BN, f32)."""
    xs = x[:, :, ::2, ::2].astype(jnp.float32)
    w2 = conv_w.reshape(conv_w.shape[0], conv_w.shape[1]).astype(jnp.float32)
    y = jnp.einsum("nchw,oc->nohw", xs, w2)
    mean = jnp.mean(y, axis=(0, 2, 3), keepdims=True)
    var = jnp.mean((y - mean) ** 2, axis=(0, 2, 3), keepdims=True)
    return ((y - mean) / jnp.sqrt(var + BN_EPS)
            * gamma.reshape(1, -1, 1, 1) + beta.reshape(1, -1, 1, 1))


if __name__ == "__main__":
    key = jax.random.PRNGKey(0)
    k_x, k_w, k_g, k_b = jax.random.split(key, 4)

    N, C_in, H, W = 2, 4, 16, 16
    C_out = 8

    x = jax.random.normal(k_x, (N, C_in, H, W), dtype=jnp.float32)
    conv_w = jax.random.normal(k_w, (C_out, C_in, 1, 1), dtype=jnp.float32) * 0.1
    gamma = 1.0 + 0.1 * jax.random.normal(k_g, (C_out,), dtype=jnp.float32)
    beta = 0.1 * jax.random.normal(k_b, (C_out,), dtype=jnp.float32)

    fwd = jax.jit(downsample_forward, static_argnames=("compute_dtype",))
    ref = _reference(x, conv_w, gamma, beta)

    # 1) f32 compute path (exercises the n_split=2 core-parallel stats path):
    #    strict check vs. the f32 module semantics.
    out_f32 = jax.block_until_ready(fwd(x, conv_w, gamma, beta,
                                        compute_dtype=jnp.float32))
    assert out_f32.shape == (N, C_out, H // 2, W // 2)
    assert jnp.allclose(out_f32, ref, atol=1e-4, rtol=1e-4)

    # 2) odd batch (n_split=1 path) with different channel/spatial sizes, f32.
    N2, C_in2, C_out2, H2, W2 = 3, 8, 16, 8, 8
    x2 = jax.random.normal(k_x, (N2, C_in2, H2, W2), dtype=jnp.float32)
    cw2 = jax.random.normal(k_w, (C_out2, C_in2, 1, 1), dtype=jnp.float32) * 0.1
    g2 = 1.0 + 0.1 * jax.random.normal(k_g, (C_out2,), dtype=jnp.float32)
    b2 = 0.1 * jax.random.normal(k_b, (C_out2,), dtype=jnp.float32)
    out2 = jax.block_until_ready(fwd(x2, cw2, g2, b2, compute_dtype=jnp.float32))
    assert jnp.allclose(out2, _reference(x2, cw2, g2, b2), atol=1e-4, rtol=1e-4)

    # 3) bf16 matmul operands (v6e/v7x perf path), f32 stats & BN: compare
    #    against the reference evaluated on the same bf16-quantized operands.
    out_bf16 = jax.block_until_ready(fwd(x, conv_w, gamma, beta,
                                         compute_dtype=jnp.bfloat16))
    ref_bf16 = _reference(x.astype(jnp.bfloat16).astype(jnp.float32),
                          conv_w.astype(jnp.bfloat16).astype(jnp.float32),
                          gamma, beta)
    assert jnp.allclose(out_bf16, ref_bf16, atol=1e-2, rtol=1e-2)

    print("KERNEL_OK")
</pallas_src>

<mosaic_0001>
module attributes {stable_mosaic.version = 11 : i64} {
  func.func @_stats_kernel(%arg0: i32, %arg1: i32, %arg2: memref<1x4x64xf32, #tpu.memory_space<vmem>>, %arg3: memref<8x4xf32, #tpu.memory_space<vmem>>, %arg4: memref<1x8x1xf32, #tpu.memory_space<vmem>>, %arg5: memref<1x8x1xf32, #tpu.memory_space<vmem>>) attributes {dimension_semantics = [#tpu.dimension_semantics<parallel>, #tpu.dimension_semantics<arbitrary>], iteration_bounds = array<i64: 2, 1>, scalar_prefetch = 0 : i64, scratch_operands = 0 : i64, tpu.core_type = #tpu.core_type<tc>, window_params = [{transform_indices = @transform_0, window_bounds = array<i64: 1, 4, 64>}, {pipeline_mode = #tpu.pipeline_mode<synchronous>, transform_indices = @transform_1, window_bounds = array<i64: 8, 4>}, {transform_indices = @transform_2, window_bounds = array<i64: 1, 8, 1>}, {transform_indices = @transform_3, window_bounds = array<i64: 1, 8, 1>}]} {
    %c0_i32 = arith.constant 0 : i32
    %0 = arith.cmpi eq, %arg1, %c0_i32 : i32
    %1 = arith.extui %0 : i1 to i32
    %c0_i32_0 = arith.constant 0 : i32
    %2 = arith.cmpi ne, %1, %c0_i32_0 : i32
    scf.if %2 {
      %cst_19 = arith.constant 0.000000e+00 : f32
      %24 = vector.broadcast %cst_19 : f32 to vector<8x1xf32>
      %c0_20 = arith.constant 0 : index
      %c0_21 = arith.constant 0 : index
      %c0_22 = arith.constant 0 : index
      %25 = vector.load %arg4[%c0_20, %c0_21, %c0_22] : memref<1x8x1xf32, #tpu.memory_space<vmem>>, vector<1x8x1xf32>
      %26 = vector.shape_cast %25 : vector<1x8x1xf32> to vector<8x1xf32>
      %27 = vector.shape_cast %24 : vector<8x1xf32> to vector<1x8x1xf32>
      tpu.vector_store %arg4[%c0_20, %c0_21, %c0_22], %27 {strides = array<i32>} : memref<1x8x1xf32, #tpu.memory_space<vmem>>, vector<1x8x1xf32>,
      %cst_23 = arith.constant 0.000000e+00 : f32
      %28 = vector.broadcast %cst_23 : f32 to vector<8x1xf32>
      %c0_24 = arith.constant 0 : index
      %c0_25 = arith.constant 0 : index
      %c0_26 = arith.constant 0 : index
      %29 = vector.load %arg5[%c0_24, %c0_25, %c0_26] : memref<1x8x1xf32, #tpu.memory_space<vmem>>, vector<1x8x1xf32>
      %30 = vector.shape_cast %29 : vector<1x8x1xf32> to vector<8x1xf32>
      %31 = vector.shape_cast %28 : vector<8x1xf32> to vector<1x8x1xf32>
      tpu.vector_store %arg5[%c0_24, %c0_25, %c0_26], %31 {strides = array<i32>} : memref<1x8x1xf32, #tpu.memory_space<vmem>>, vector<1x8x1xf32>,
    } else {
    }
    %c0 = arith.constant 0 : index
    %c0_1 = arith.constant 0 : index
    %3 = vector.load %arg3[%c0, %c0_1] : memref<8x4xf32, #tpu.memory_space<vmem>>, vector<8x4xf32>
    %c0_2 = arith.constant 0 : index
    %c0_3 = arith.constant 0 : index
    %c0_4 = arith.constant 0 : index
    %4 = vector.load %arg2[%c0_2, %c0_3, %c0_4] : memref<1x4x64xf32, #tpu.memory_space<vmem>>, vector<1x4x64xf32>
    %5 = vector.shape_cast %4 : vector<1x4x64xf32> to vector<4x64xf32>
    %cst = arith.constant dense<0.000000e+00> : vector<8x64xf32>
    %6 = tpu.matmul %3, %5, %cst {dimension_numbers = #tpu.dot_dimension_numbers<[1], [0], [0], [1], [0, 0, 1, 1], [], []>} : vector<8x4xf32>, vector<4x64xf32>, vector<8x64xf32> -> vector<8x64xf32>
    %c0_5 = arith.constant 0 : index
    %c0_6 = arith.constant 0 : index
    %c0_7 = arith.constant 0 : index
    %7 = vector.load %arg4[%c0_5, %c0_6, %c0_7] : memref<1x8x1xf32, #tpu.memory_space<vmem>>, vector<1x8x1xf32>
    %8 = vector.shape_cast %7 : vector<1x8x1xf32> to vector<8x1xf32>
    %cst_8 = arith.constant dense<0.000000e+00> : vector<8xf32>
    %9 = vector.multi_reduction <add>, %6, %cst_8 [1] : vector<8x64xf32> to vector<8xf32>
    %10 = vector.shape_cast %9 : vector<8xf32> to vector<8x1xf32>
    %11 = arith.addf %8, %10 : vector<8x1xf32>
    %c0_9 = arith.constant 0 : index
    %c0_10 = arith.constant 0 : index
    %c0_11 = arith.constant 0 : index
    %12 = vector.load %arg4[%c0_9, %c0_10, %c0_11] : memref<1x8x1xf32, #tpu.memory_space<vmem>>, vector<1x8x1xf32>
    %13 = vector.shape_cast %12 : vector<1x8x1xf32> to vector<8x1xf32>
    %14 = vector.shape_cast %11 : vector<8x1xf32> to vector<1x8x1xf32>
    tpu.vector_store %arg4[%c0_9, %c0_10, %c0_11], %14 {strides = array<i32>} : memref<1x8x1xf32, #tpu.memory_space<vmem>>, vector<1x8x1xf32>,
    %c0_12 = arith.constant 0 : index
    %c0_13 = arith.constant 0 : index
    %c0_14 = arith.constant 0 : index
    %15 = vector.load %arg5[%c0_12, %c0_13, %c0_14] : memref<1x8x1xf32, #tpu.memory_space<vmem>>, vector<1x8x1xf32>
    %16 = vector.shape_cast %15 : vector<1x8x1xf32> to vector<8x1xf32>
    %17 = arith.mulf %6, %6 : vector<8x64xf32>
    %cst_15 = arith.constant dense<0.000000e+00> : vector<8xf32>
    %18 = vector.multi_reduction <add>, %17, %cst_15 [1] : vector<8x64xf32> to vector<8xf32>
    %19 = vector.shape_cast %18 : vector<8xf32> to vector<8x1xf32>
    %20 = arith.addf %16, %19 : vector<8x1xf32>
    %c0_16 = arith.constant 0 : index
    %c0_17 = arith.constant 0 : index
    %c0_18 = arith.constant 0 : index
    %21 = vector.load %arg5[%c0_16, %c0_17, %c0_18] : memref<1x8x1xf32, #tpu.memory_space<vmem>>, vector<1x8x1xf32>
    %22 = vector.shape_cast %21 : vector<1x8x1xf32> to vector<8x1xf32>
    %23 = vector.shape_cast %20 : vector<8x1xf32> to vector<1x8x1xf32>
    tpu.vector_store %arg5[%c0_16, %c0_17, %c0_18], %23 {strides = array<i32>} : memref<1x8x1xf32, #tpu.memory_space<vmem>>, vector<1x8x1xf32>,
    return
  }
  func.func @transform_0(%arg0: i32, %arg1: i32) -> (i32, i32, i32) {
    %c1_i32 = arith.constant 1 : i32
    %0 = arith.muli %arg0, %c1_i32 : i32
    %1 = arith.addi %0, %arg1 : i32
    %c0_i32 = arith.constant 0 : i32
    %c0_i32_0 = arith.constant 0 : i32
    %c0_i32_1 = arith.constant 0 : i32
    return %1, %c0_i32, %c0_i32_0 : i32, i32, i32
  }
  func.func @transform_1(%arg0: i32, %arg1: i32) -> (i32, i32) {
    %c0_i32 = arith.constant 0 : i32
    %c0_i32_0 = arith.constant 0 : i32
    %c0_i32_1 = arith.constant 0 : i32
    return %c0_i32, %c0_i32_0 : i32, i32
  }
  func.func @transform_2(%arg0: i32, %arg1: i32) -> (i32, i32, i32) {
    %c0_i32 = arith.constant 0 : i32
    %c0_i32_0 = arith.constant 0 : i32
    %c0_i32_1 = arith.constant 0 : i32
    return %arg0, %c0_i32, %c0_i32_0 : i32, i32, i32
  }
  func.func @transform_3(%arg0: i32, %arg1: i32) -> (i32, i32, i32) {
    %c0_i32 = arith.constant 0 : i32
    %c0_i32_0 = arith.constant 0 : i32
    %c0_i32_1 = arith.constant 0 : i32
    return %arg0, %c0_i32, %c0_i32_0 : i32, i32, i32
  }
}

module attributes {stable_mosaic.version = 11 : i64} {
  func.func @_conv_bn_kernel(%arg0: i32, %arg1: memref<1x4x64xf32, #tpu.memory_space<vmem>>, %arg2: memref<8x4xf32, #tpu.memory_space<vmem>>, %arg3: memref<8x1xf32, #tpu.memory_space<vmem>>, %arg4: memref<8x1xf32, #tpu.memory_space<vmem>>, %arg5: memref<1x8x64xf32, #tpu.memory_space<vmem>>) attributes {dimension_semantics = [#tpu.dimension_semantics<parallel>], iteration_bounds = array<i64: 2>, scalar_prefetch = 0 : i64, scratch_operands = 0 : i64, tpu.core_type = #tpu.core_type<tc>, window_params = [{transform_indices = @transform_0, window_bounds = array<i64: 1, 4, 64>}, {pipeline_mode = #tpu.pipeline_mode<synchronous>, transform_indices = @transform_1, window_bounds = array<i64: 8, 4>}, {pipeline_mode = #tpu.pipeline_mode<synchronous>, transform_indices = @transform_2, window_bounds = array<i64: 8, 1>}, {pipeline_mode = #tpu.pipeline_mode<synchronous>, transform_indices = @transform_3, window_bounds = array<i64: 8, 1>}, {transform_indices = @transform_4, window_bounds = array<i64: 1, 8, 64>}]} {
    %c0 = arith.constant 0 : index
    %c0_0 = arith.constant 0 : index
    %0 = vector.load %arg2[%c0, %c0_0] : memref<8x4xf32, #tpu.memory_space<vmem>>, vector<8x4xf32>
    %c0_1 = arith.constant 0 : index
    %c0_2 = arith.constant 0 : index
    %c0_3 = arith.constant 0 : index
    %1 = vector.load %arg1[%c0_1, %c0_2, %c0_3] : memref<1x4x64xf32, #tpu.memory_space<vmem>>, vector<1x4x64xf32>
    %2 = vector.shape_cast %1 : vector<1x4x64xf32> to vector<4x64xf32>
    %cst = arith.constant dense<0.000000e+00> : vector<8x64xf32>
    %3 = tpu.matmul %0, %2, %cst {dimension_numbers = #tpu.dot_dimension_numbers<[1], [0], [0], [1], [0, 0, 1, 1], [], []>} : vector<8x4xf32>, vector<4x64xf32>, vector<8x64xf32> -> vector<8x64xf32>
    %c0_4 = arith.constant 0 : index
    %c0_5 = arith.constant 0 : index
    %4 = vector.load %arg3[%c0_4, %c0_5] : memref<8x1xf32, #tpu.memory_space<vmem>>, vector<8x1xf32>
    %5 = vector.broadcast %4 : vector<8x1xf32> to vector<8x64xf32>
    %6 = arith.mulf %3, %5 : vector<8x64xf32>
    %c0_6 = arith.constant 0 : index
    %c0_7 = arith.constant 0 : index
    %7 = vector.load %arg4[%c0_6, %c0_7] : memref<8x1xf32, #tpu.memory_space<vmem>>, vector<8x1xf32>
    %8 = vector.broadcast %7 : vector<8x1xf32> to vector<8x64xf32>
    %9 = arith.addf %6, %8 : vector<8x64xf32>
    %c0_8 = arith.constant 0 : index
    %c0_9 = arith.constant 0 : index
    %c0_10 = arith.constant 0 : index
    %10 = vector.load %arg5[%c0_8, %c0_9, %c0_10] : memref<1x8x64xf32, #tpu.memory_space<vmem>>, vector<1x8x64xf32>
    %11 = vector.shape_cast %10 : vector<1x8x64xf32> to vector<8x64xf32>
    %12 = vector.shape_cast %9 : vector<8x64xf32> to vector<1x8x64xf32>
    tpu.vector_store %arg5[%c0_8, %c0_9, %c0_10], %12 {strides = array<i32>} : memref<1x8x64xf32, #tpu.memory_space<vmem>>, vector<1x8x64xf32>,
    return
  }
  func.func @transform_0(%arg0: i32) -> (i32, i32, i32) {
    %c0_i32 = arith.constant 0 : i32
    %c0_i32_0 = arith.constant 0 : i32
    %c0_i32_1 = arith.constant 0 : i32
    return %arg0, %c0_i32, %c0_i32_0 : i32, i32, i32
  }
  func.func @transform_1(%arg0: i32) -> (i32, i32) {
    %c0_i32 = arith.constant 0 : i32
    %c0_i32_0 = arith.constant 0 : i32
    %c0_i32_1 = arith.constant 0 : i32
    return %c0_i32, %c0_i32_0 : i32, i32
  }
  func.func @transform_2(%arg0: i32) -> (i32, i32) {
    %c0_i32 = arith.constant 0 : i32
    %c0_i32_0 = arith.constant 0 : i32
    %c0_i32_1 = arith.constant 0 : i32
    return %c0_i32, %c0_i32_0 : i32, i32
  }
  func.func @transform_3(%arg0: i32) -> (i32, i32) {
    %c0_i32 = arith.constant 0 : i32
    %c0_i32_0 = arith.constant 0 : i32
    %c0_i32_1 = arith.constant 0 : i32
    return %c0_i32, %c0_i32_0 : i32, i32
  }
  func.func @transform_4(%arg0: i32) -> (i32, i32, i32) {
    %c0_i32 = arith.constant 0 : i32
    %c0_i32_0 = arith.constant 0 : i32
    %c0_i32_1 = arith.constant 0 : i32
    return %arg0, %c0_i32, %c0_i32_0 : i32, i32, i32
  }
}

</mosaic_0001>

<bundles_post_ra>
// kernel: downsample_forward.2
= control target key start
LH: loop header
LB: loop body
LE: loop exit
PB: predicated region body
PF: predicated region fallthrough
CT: control target
= control target key end

     0   :  { %s481_s12 = smov 0   ;;  %s483_s13 = smov 0   ;;  %s524_s0 = inlined_call_operand.vmem [shape: f32[2,4,64], index: 0, kind: input, shape index: {}]   ;;  %s525_s1 = inlined_call_operand.vmem [shape: f32[8,4], index: 1, kind: input, shape index: {}]   ;;  %s526_s2 = inlined_call_operand.vmem [shape: f32[2,8,1], index: 2, kind: output, shape index: {0}]   ;;  %s527_s3 = inlined_call_operand.vmem [shape: f32[2,8,1], index: 3, kind: output, shape index: {1}]  }
   0x1   :  { %s485_s14 = smov 0  }
   0x2 LB: > { %s26_s15 = sadd.s32 1, %s453_s13  ;;  %p394_p0 = scmp.ge.s32.totalorder %s457_s14, 1  ;;  %s457_s14 = sphi %s485_s14, %s14_s14   ;;  %s453_s13 = sphi %s483_s13, %s529_s13   ;;  %s449_s12 = sphi %s481_s12, %s528_s12  }
   0x3   : > { %p28_p1 = scmp.ge.s32.totalorder %s26_s15, 2  ;;  %p155_p2 = scmp.lt.s32.totalorder %s457_s14, 3 }
   0x5   : > { %s531_s15 = smov (%p28_p1, %s26_s15), 0  ;;  %p156_p3 = pnand %p394_p0, %p155_p2 }
   0x6   : > { %p183_p4 = scmp.lt.s32.totalorder (!%p156_p3), %s449_s12, 1  ;;  %v459_v0 = vmov (!%p156_p3), 0.0   ;;  %vm460_vm0 = vmmov (!%p156_p3), 0   ;;  %vm209_vm1 = vcmask (!%p156_p3), 1043456   ;;  %v203_v1 = vld [vmem:[%s525_s1] sm:$0xff] (!%p156_p3)  ;;  %vm205_vm2 = vcmask (!%p156_p3), 31744  }
   0x7   : > { %159 = sbr.rel (%p156_p3) target bundleno = 381 (0x17d), region = 28  ;;  %404 = vmatprep.subr.mxu0 (!%p156_p3), %v459_v0  ;;  %406 = vmatprep.mubr.msk.f32.mxu0 (!%p156_p3), %vm460_vm0, %v459_v0  ;;  %vm200_vm3 = vcmask (!%p156_p3), 7168   ;;  %vm284_vm4 = vcmask (!%p156_p3), 523264  }
   0xe   : > { %s533_s12 = smov (!%p183_p4, %s449_s12), 1 }
   0xf   : > { %s395_s16 = sshll.u32 %s533_s12, 2  ;;  %s396_s22 = sshll.u32 %s533_s12, 3 }
  0x10   : > { %s186_s19 = scalar_lea.vmem %s524_s0, %s395_s16  ;;  %s191_s25 = scalar_lea.vmem %s526_s2, %s396_s22 }
  0x11   : > { %v204_v2 = vld [vmem:[%s186_s19] sm:$0xf]  ;;  %201 = vst.msk [vmem:[%s191_s25] sm:$0xff] %vm200_vm3, %v459_v0  ;;  %s195_s28 = scalar_lea.vmem %s527_s3, %s396_s22 }
  0x12   : > { %405 = vmatpush3.msk.msra.mxu0 %vm209_vm1, %v204_v2  ;;  %202 = vst.msk [vmem:[%s195_s28] sm:$0xff] %vm200_vm3, %v459_v0 }
  0x13   : > { %407 = vmatmul.mubr.msk.f32.vlgmr.msra.gmra.mrb[0].mxu0 %vm205_vm2, %v203_v1 }
  0x18   : > { %v283_v8 = vld [vmem:[%s191_s25] sm:$0xff] }
  0x19   : > { %v291_v11 = vld [vmem:[%s195_s28] sm:$0xff] }
  0xe6   : > { %v279_v3 = vpop.f32.mrb[0].mxu0 }
  0xe7   : > { %v292_v4 = vmul.f32 %v279_v3, %v279_v3  ;;  %v408_v5 = vpop.f32.mrb[1].mxu0  ;;  %v285_v6 = vsel %vm284_vm4, %v279_v3, 0.0 }
  0xe8   : > { %286 = vadd.xlane.f32.xlu0 %v285_v6 }
  0xe9   : > { %v293_v7 = vsel %vm284_vm4, %v292_v4, 0.0 }
  0xec   : > { %294 = vadd.xlane.f32.xlu0 %v293_v7 }
 0x175   : > { %v287_v9 = vpop.xlane.xlu0 %286 }
 0x176   : > { %v288_v10 = vadd.f32 %v287_v9, %v283_v8 }
 0x178   : > { %290 = vst.msk [vmem:[%s191_s25] sm:$0xff] %vm200_vm3, %v288_v10 }
 0x179   : > { %v295_v12 = vpop.xlane.xlu0 %294 }
 0x17a   : > { %v296_v13 = vadd.f32 %v295_v12, %v291_v11 }
 0x17c   : > { %297 = vst.msk [vmem:[%s195_s28] sm:$0xff] %vm200_vm3, %v296_v13 }
 0x17d PF: > { %s14_s14 = sadd.s32 1, %s457_s14   ;;  %s528_s12 = smov %s453_s13 }
 0x17e   : > { %p11_p5 = scmp.ge.s32.totalorder %s14_s14, 4   ;;  %s529_s13 = smov %s531_s15 }
 0x180   :  { %13 = sbr.rel (!%p11_p5) target bundleno = 2 (0x2), region = 74 }

// kernel: downsample_forward.3
= control target key start
LH: loop header
LB: loop body
LE: loop exit
PB: predicated region body
PF: predicated region fallthrough
CT: control target
= control target key end

     0   :  { %s408_s15 = smov 0   ;;  %s434_s0 = inlined_call_operand.vmem [shape: f32[2,4,64], index: 0, kind: input, shape index: {}]   ;;  %s435_s1 = inlined_call_operand.vmem [shape: f32[8,4], index: 1, kind: input, shape index: {}]   ;;  %s436_s2 = inlined_call_operand.vmem [shape: f32[8,1], index: 2, kind: input, shape index: {}]   ;;  %s437_s3 = inlined_call_operand.vmem [shape: f32[8,1], index: 3, kind: input, shape index: {}]   ;;  %s438_s4 = inlined_call_operand.vmem [shape: f32[2,8,64], index: 4, kind: output, shape index: {}]  }
   0x1 LB: > { %s342_s16 = sadd.s32 4294967295, %s378_s15   ;;  %p346_p0 = scmp.ge.s32.totalorder %s378_s15, 1  ;;  %s378_s15 = sphi %s408_s15, %s14_s15  }
   0x2   : > { %p161_p1 = scmp.lt.s32.totalorder %s378_s15, 3 }
   0x4   : > { %p162_p2 = pnand %p346_p0, %p161_p1 }
   0x5   : > { %p185_p3 = scmp.lt.s32.totalorder (!%p162_p2), %s342_s16, 1  ;;  %v380_v0 = vmov (!%p162_p2), 0.0   ;;  %vm381_vm0 = vmmov (!%p162_p2), 0   ;;  %v273_v1 = vld [vmem:[%s436_s2] sm:$0xff] (!%p162_p2)  ;;  %v382_v2 = vmov (!%p162_p2), 0   ;;  %vm199_vm1 = vcmask (!%p162_p2), 1043456  }
   0x6   : > { %165 = sbr.rel (%p162_p2) target bundleno = 235 (0xeb), region = 36  ;;  %355 = vmatprep.subr.mxu0 (!%p162_p2), %v380_v0  ;;  %357 = vmatprep.mubr.msk.f32.mxu0 (!%p162_p2), %vm381_vm0, %v380_v0  ;;  %v280_v3 = vld [vmem:[%s437_s3] sm:$0xff] (!%p162_p2)  ;;  %vm195_vm2 = vcmask (!%p162_p2), 31744   ;;  %vm287_vm3 = vcmask (!%p162_p2), 523264  }
   0x7   : > { %371 = vset.pattern.permute.xlu0 (!%p162_p2), %v382_v2  ;;  %v193_v4 = vld [vmem:[%s435_s1] sm:$0xff] (!%p162_p2) }
   0x8   : > { %276 = vperm.xlu0 (!%p162_p2), %371, %v273_v1  }
   0xc   : > { %283 = vperm.xlu0 (!%p162_p2), %371, %v280_v3  }
   0xd   : > { %s440_s16 = smov (!%p185_p3, %s342_s16), 1 }
   0xe   : > { %s347_s19 = sshll.u32 %s440_s16, 2  ;;  %s348_s27 = sshll.u32 %s440_s16, 3 }
   0xf   : > { %s188_s24 = scalar_lea.vmem %s434_s0, %s347_s19  ;;  %s192_s30 = scalar_lea.vmem %s438_s4, %s348_s27 }
  0x10   : > { %v194_v5 = vld [vmem:[%s188_s24] sm:$0xf] }
  0x11   : > { %356 = vmatpush3.msk.msra.mxu0 %vm199_vm1, %v194_v5 }
  0x12   : > { %358 = vmatmul.mubr.msk.f32.vlgmr.msra.gmra.mrb[0].mxu0 %vm195_vm2, %v193_v4 }
  0x87   : > { %v277_v6 = vpop.permute.xlu0 %276 }
  0x8b   : > { %v284_v10 = vpop.permute.xlu0 %283 }
  0xe5   : > { %v269_v7 = vpop.f32.mrb[0].mxu0 }
  0xe6   : > { %v279_v8 = vmul.f32 %v277_v6, %v269_v7  ;;  %v359_v9 = vpop.f32.mrb[1].mxu0 }
  0xe8   : > { %v286_v11 = vadd.f32 %v284_v10, %v279_v8 }
  0xea   : > { %288 = vst.msk [vmem:[%s192_s30] sm:$0xff] %vm287_vm3, %v286_v11 }
  0xeb PF: > { %s14_s15 = sadd.s32 1, %s378_s15  }
  0xec   : > { %p11_p4 = scmp.ge.s32.totalorder %s14_s15, 4  }
  0xee   :  { %13 = sbr.rel (!%p11_p4) target bundleno = 1 (0x1), region = 66 }

</bundles_post_ra>
